<compile_context>
chip_gen: v7x
topology: tpu7x:2x2x1
jax: 0.10.0
libtpu: 0.0.40
codegen_flags: <defaults>
</compile_context>

<pallas_src>
import functools

import numpy as np

import jax
import jax.numpy as jnp
from jax.experimental import pallas as pl
from jax.experimental.pallas import tpu as pltpu


# (dy, dx) / (ei, ej) offsets of the 2x2 sub-blocks of the 4x4 kernel; index = 2*a + b.
OFFSETS = ((0, 0), (0, 1), (1, 0), (1, 1))


# ----------------------------------------------------------------------------
# Host-side (one-time) constant builders: 0/1 scatter / gather matrices and
# weight re-orderings.  These encode all spatial index bookkeeping so the kernel
# itself only does matmuls + column-slice copies.
# ----------------------------------------------------------------------------
def _one_hot_rows(idx, num_cols, dtype):
    """Rows of a 0/1 selection matrix; idx == -1 gives an all-zero row (zero padding)."""
    idx = np.asarray(idx, dtype=np.int64).reshape(-1)
    m = (idx[:, None] == np.arange(num_cols)[None, :]).astype(np.float32)
    return jnp.asarray(m, dtype=dtype)          # 0/1 is exact in bf16


def _scatter_matrix(batch, tiles, src_sp, dtype):
    """Stacked matrices that scatter conv1's (b, oy, ox)-ordered rows into the
    space-to-depth layout of its zero-padded feature map (one block per (dy, dx))."""
    rows = []
    for dy, dx in OFFSETS:
        for b in range(batch):
            for ty in range(tiles):
                for tx in range(tiles):
                    oy, ox = 2 * ty + dy - 1, 2 * tx + dx - 1
                    ok = (0 <= oy < src_sp) and (0 <= ox < src_sp)
                    rows.append(b * src_sp * src_sp + oy * src_sp + ox if ok else -1)
    return _one_hot_rows(rows, batch * src_sp * src_sp, dtype)


def _gather_matrix(batch, tiles, out_sp, dtype):
    """Stacked gather matrices for the 4 shifted space-to-depth views of the padded
    conv1 feature map.  Rows inside each view block are ordered (oy, ox, b) so that
    conv2's output rows come out (spatial, batch) — what the fc1 lane-packing wants."""
    rows = []
    for ei, ej in OFFSETS:
        for oy in range(out_sp):
            for ox in range(out_sp):
                for b in range(batch):
                    rows.append(b * tiles * tiles + (oy + ei) * tiles + (ox + ej))
    return _one_hot_rows(rows, batch * tiles * tiles, dtype)


def _conv1_weight(w_oihw, dtype):
    """(Cout, Cin, 4, 4) PyTorch layout -> (4*4*Cin, Cout), rows ordered (ki, kj, cin)
    to match the wrapper-built im2col columns."""
    cout = w_oihw.shape[0]
    return jnp.transpose(w_oihw, (2, 3, 1, 0)).reshape(-1, cout).astype(dtype)


def _conv2_weight_views(w_oihw, dtype):
    """(Cout, Cin, 4, 4) -> (4*4*Cin, Cout), rows ordered (view=(ei,ej), dy, dx, cin),
    matching the space-to-depth / 4-shifted-view feature order of the in-kernel im2col."""
    cout, cin = w_oihw.shape[0], w_oihw.shape[1]
    w = jnp.transpose(w_oihw, (2, 3, 1, 0))            # (ki, kj, cin, cout)
    w = w.reshape(2, 2, 2, 2, cin, cout)               # (ei, dy, ej, dx, cin, cout)
    w = jnp.transpose(w, (0, 2, 1, 3, 4, 5))           # (ei, ej, dy, dx, cin, cout)
    return w.reshape(4 * 4 * cin, cout).astype(dtype)


def _fc1_weight_hwc(fc1_w, c2, spatial, dtype):
    """fc1 weight with PyTorch CHW feature order -> rows ordered (spatial, channel),
    removing the runtime NCHW flatten/transpose before fc1."""
    n = fc1_w.shape[1]
    w = fc1_w.reshape(c2, spatial, n)                  # (c, s, n)
    return jnp.transpose(w, (1, 0, 2)).reshape(spatial * c2, n).astype(dtype)


# ----------------------------------------------------------------------------
# Fused forward: build host constants once, return a jitted x -> logits fn.
# ----------------------------------------------------------------------------
def make_cnn4layer_forward(params, *, batch, in_ch, in_dim, width=2, linear_size=32):
    bf16 = jnp.bfloat16
    c1, c2 = 4 * width, 8 * width
    sp1, sp2 = in_dim // 2, in_dim // 4            # conv1 / conv2 output spatial
    t2 = (sp1 + 2) // 2                            # s2d tiles of the padded conv1 map
    m1, m2 = batch * sp1 * sp1, batch * sp2 * sp2  # conv1 / conv2 output rows
    ms = batch * t2 * t2                           # rows of conv2's s2d input
    s2 = sp2 * sp2                                 # spatial positions feeding fc1
    n1, n2 = linear_size, params["fc2_w"].shape[1]

    sc = _scatter_matrix(batch, t2, sp1, bf16)             # (4*ms, m1)
    g2 = _gather_matrix(batch, t2, sp2, bf16)              # (4*m2, ms)
    w1 = _conv1_weight(params["conv1_w"], bf16)            # (16*in_ch, c1)
    w2v = _conv2_weight_views(params["conv2_w"], bf16)     # (16*c1, c2)
    wf1 = _fc1_weight_hwc(params["fc1_w"], c2, s2, bf16)   # (s2*c2, n1)
    wf2 = params["fc2_w"].astype(bf16)                     # (n1, n2)
    bias = jnp.concatenate([params["conv1_b"], params["conv2_b"],
                            params["fc1_b"], params["fc2_b"]]
                           ).astype(jnp.float32).reshape(1, -1)   # (1, c1+c2+n1+n2)

    def kernel(s0_ref, sc_ref, g2_ref, w1_ref, w2_ref, wf1_ref, wf2_ref, bias_ref,
               out_ref, s1_ref, im2_ref, flat_ref):
        dot = functools.partial(jnp.dot, preferred_element_type=jnp.float32)
        b_all = bias_ref[...]                                   # (1, c1+c2+n1+n2) f32

        # ---- conv1 + ReLU: ONE (m1, 16*Cin) x (16*Cin, c1) matmul on im2col rows.
        y1 = jnp.maximum(dot(s0_ref[...], w1_ref[...]) + b_all[:, 0:c1], 0.0)   # (m1, c1)

        # ---- conv1 -> conv2: scatter y1 (zero-padded) into the space-to-depth layout
        # with ONE matmul, then place the 4 (dy,dx) row-blocks into lane-column blocks.
        p1 = dot(sc_ref[...], y1.astype(bf16))                                  # (4*ms, c1)
        for blk in range(4):
            s1_ref[:, blk * c1:(blk + 1) * c1] = p1[blk * ms:(blk + 1) * ms, :]

        # ---- conv2 + ReLU: gather the 4 shifted views with ONE matmul, assemble the
        # K=16*c1 im2col slab, then ONE matmul against the stacked view weights.
        gv2 = dot(g2_ref[...], s1_ref[...].astype(bf16))                        # (4*m2, 4*c1)
        for v in range(4):
            im2_ref[:, v * 4 * c1:(v + 1) * 4 * c1] = gv2[v * m2:(v + 1) * m2, :]
        y2 = jnp.maximum(dot(im2_ref[...].astype(bf16), w2_ref[...])
                         + b_all[:, c1:c1 + c2], 0.0)                           # (m2, c2), rows (s, b)

        # ---- fc1 + ReLU: lane-pack the s2 per-spatial (batch, c2) slices (pure VMEM
        # column copies), then ONE K = s2*c2 matmul against host-permuted fc1 weights.
        for s in range(s2):
            flat_ref[:, s * c2:(s + 1) * c2] = y2[s * batch:(s + 1) * batch, :]
        h = jnp.maximum(dot(flat_ref[...].astype(bf16), wf1_ref[...])
                        + b_all[:, c1 + c2:c1 + c2 + n1], 0.0)                  # (batch, n1)

        # ---- fc2: the only HBM store in the whole network.
        out = dot(h.astype(bf16), wf2_ref[...]) + b_all[:, c1 + c2 + n1:]
        out_ref[...] = out.astype(out_ref.dtype)

    def _full_block(a):
        return pl.BlockSpec(a.shape, lambda: (0,) * a.ndim)

    consts = (sc, g2, w1, w2v, wf1, wf2, bias)

    def pallas_forward(s0):
        return pl.pallas_call(
            kernel,
            out_shape=jax.ShapeDtypeStruct((batch, n2), jnp.float32),
            in_specs=[_full_block(s0)] + [_full_block(c) for c in consts],
            out_specs=pl.BlockSpec((batch, n2), lambda: (0, 0)),
            scratch_shapes=[pltpu.VMEM((ms, 4 * c1), jnp.float32),      # s2d of conv1 out
                            pltpu.VMEM((m2, 16 * c1), jnp.float32),     # conv2 im2col
                            pltpu.VMEM((batch, s2 * c2), jnp.float32)], # fc1 input
        )(s0, *consts)

    @jax.jit
    def forward(x_nchw):
        # Wrapper-side layout prep (one fused XLA op, ~16 KB output): NCHW -> padded
        # NHWC -> conv1 im2col rows (b, oy, ox) x cols (ki, kj, cin), cast to bf16.
        x = jnp.transpose(x_nchw, (0, 2, 3, 1))
        xp = jnp.pad(x, ((0, 0), (1, 1), (1, 1), (0, 0)))
        views = [xp[:, ki:ki + 2 * sp1:2, kj:kj + 2 * sp1:2, :]
                 for ki in range(4) for kj in range(4)]
        s0 = jnp.stack(views, axis=3).reshape(m1, 16 * in_ch).astype(bf16)
        return pallas_forward(s0)

    return forward


# ----------------------------------------------------------------------------
# Parameters (PyTorch layouts) and pure-JAX reference for the correctness check.
# ----------------------------------------------------------------------------
def init_params(key, in_ch, in_dim, width=2, linear_size=32):
    c1, c2 = 4 * width, 8 * width
    flat = c2 * (in_dim // 4) * (in_dim // 4)
    keys = jax.random.split(key, 8)

    def normal(k, shape, scale):
        return (scale * jax.random.normal(k, shape)).astype(jnp.float32)

    return {
        # PyTorch Conv2d weight layout: (out_ch, in_ch, kh, kw)
        "conv1_w": normal(keys[0], (c1, in_ch, 4, 4), 0.1),
        "conv1_b": normal(keys[1], (c1,), 0.1),
        "conv2_w": normal(keys[2], (c2, c1, 4, 4), 0.1),
        "conv2_b": normal(keys[3], (c2,), 0.1),
        # Linear stored as (in_features, out_features) so forward is x @ w + b
        "fc1_w": normal(keys[4], (flat, linear_size), 0.05),
        "fc1_b": normal(keys[5], (linear_size,), 0.05),
        "fc2_w": normal(keys[6], (linear_size, 10), 0.05),
        "fc2_b": normal(keys[7], (10,), 0.05),
    }


def reference_forward(x_nchw, params):
    def conv(x, w, b, stride, pad):
        y = jax.lax.conv_general_dilated(
            x, w, window_strides=(stride, stride),
            padding=[(pad, pad), (pad, pad)],
            dimension_numbers=("NCHW", "OIHW", "NCHW"),
        )
        return y + b[None, :, None, None]

    x = jax.nn.relu(conv(x_nchw, params["conv1_w"], params["conv1_b"], 2, 1))
    x = jax.nn.relu(conv(x, params["conv2_w"], params["conv2_b"], 2, 1))
    x = x.reshape(x.shape[0], -1)
    x = jax.nn.relu(x @ params["fc1_w"] + params["fc1_b"])
    return x @ params["fc2_w"] + params["fc2_b"]


if __name__ == "__main__":
    B, IN_CH, IN_DIM = 2, 4, 16
    WIDTH, LINEAR_SIZE = 2, 32

    key = jax.random.PRNGKey(0)
    k_x, k_p = jax.random.split(key)
    x = jax.random.normal(k_x, (B, IN_CH, IN_DIM, IN_DIM), dtype=jnp.float32)
    params = init_params(k_p, IN_CH, IN_DIM, width=WIDTH, linear_size=LINEAR_SIZE)

    forward = make_cnn4layer_forward(params, batch=B, in_ch=IN_CH, in_dim=IN_DIM,
                                     width=WIDTH, linear_size=LINEAR_SIZE)

    out = jax.block_until_ready(forward(x))
    assert out.shape == (B, 10), out.shape

    ref = jax.block_until_ready(reference_forward(x, params))
    # bf16 constants + explicit bf16 activation casts reproduce exactly the operand
    # rounding TPU DEFAULT matmul precision applies anyway; 1e-3 covers it while still
    # catching any real indexing/layout bug (which would be O(1) off).
    assert jnp.allclose(out, ref, atol=1e-3, rtol=1e-3), "mismatch vs JAX reference"

    print("KERNEL_OK")
</pallas_src>

<mosaic_0001>
module attributes {stable_mosaic.version = 11 : i64} {
  func.func @kernel(%arg0: memref<128x64xbf16, #tpu.memory_space<vmem>>, %arg1: memref<200x128xbf16, #tpu.memory_space<vmem>>, %arg2: memref<128x50xbf16, #tpu.memory_space<vmem>>, %arg3: memref<64x8xbf16, #tpu.memory_space<vmem>>, %arg4: memref<128x16xbf16, #tpu.memory_space<vmem>>, %arg5: memref<256x32xbf16, #tpu.memory_space<vmem>>, %arg6: memref<32x10xbf16, #tpu.memory_space<vmem>>, %arg7: memref<1x66xf32, #tpu.memory_space<vmem>>, %arg8: memref<2x10xf32, #tpu.memory_space<vmem>>, %arg9: memref<50x32xf32, #tpu.memory_space<vmem>>, %arg10: memref<32x128xf32, #tpu.memory_space<vmem>>, %arg11: memref<2x256xf32, #tpu.memory_space<vmem>>) attributes {dimension_semantics = [], scalar_prefetch = 0 : i64, scratch_operands = 3 : i64, tpu.core_type = #tpu.core_type<tc>} {
    %c0 = arith.constant 0 : index
    %c0_0 = arith.constant 0 : index
    %0 = vector.load %arg7[%c0, %c0_0] : memref<1x66xf32, #tpu.memory_space<vmem>>, vector<1x66xf32>
    %c0_1 = arith.constant 0 : index
    %c0_2 = arith.constant 0 : index
    %1 = vector.load %arg0[%c0_1, %c0_2] : memref<128x64xbf16, #tpu.memory_space<vmem>>, vector<128x64xbf16>
    %c0_3 = arith.constant 0 : index
    %c0_4 = arith.constant 0 : index
    %2 = vector.load %arg3[%c0_3, %c0_4] : memref<64x8xbf16, #tpu.memory_space<vmem>>, vector<64x8xbf16>
    %cst = arith.constant dense<0.000000e+00> : vector<128x8xf32>
    %3 = tpu.matmul %1, %2, %cst {dimension_numbers = #tpu.dot_dimension_numbers<[1], [0], [0], [1], [0, 0, 1, 1], [], []>} : vector<128x64xbf16>, vector<64x8xbf16>, vector<128x8xf32> -> vector<128x8xf32>
    %4 = vector.extract_strided_slice %0 {offsets = [0, 0], sizes = [1, 8], strides = [1, 1]} : vector<1x66xf32> to vector<1x8xf32>
    %5 = vector.broadcast %4 : vector<1x8xf32> to vector<128x8xf32>
    %6 = arith.addf %3, %5 : vector<128x8xf32>
    %cst_5 = arith.constant 0.000000e+00 : f32
    %7 = vector.broadcast %cst_5 : f32 to vector<128x8xf32>
    %8 = arith.maximumf %6, %7 : vector<128x8xf32>
    %c0_6 = arith.constant 0 : index
    %c0_7 = arith.constant 0 : index
    %9 = vector.load %arg1[%c0_6, %c0_7] : memref<200x128xbf16, #tpu.memory_space<vmem>>, vector<200x128xbf16>
    %10 = arith.truncf %8 : vector<128x8xf32> to vector<128x8xbf16>
    %cst_8 = arith.constant dense<0.000000e+00> : vector<200x8xf32>
    %11 = tpu.matmul %9, %10, %cst_8 {dimension_numbers = #tpu.dot_dimension_numbers<[1], [0], [0], [1], [0, 0, 1, 1], [], []>} : vector<200x128xbf16>, vector<128x8xbf16>, vector<200x8xf32> -> vector<200x8xf32>
    %12 = vector.extract_strided_slice %11 {offsets = [0, 0], sizes = [50, 8], strides = [1, 1]} : vector<200x8xf32> to vector<50x8xf32>
    %c0_9 = arith.constant 0 : index
    %c0_10 = arith.constant 0 : index
    %13 = vector.load %arg9[%c0_9, %c0_10] : memref<50x32xf32, #tpu.memory_space<vmem>>, vector<50x8xf32>
    tpu.vector_store %arg9[%c0_9, %c0_10], %12 {strides = array<i32>} : memref<50x32xf32, #tpu.memory_space<vmem>>, vector<50x8xf32>,
    %14 = vector.extract_strided_slice %11 {offsets = [50, 0], sizes = [50, 8], strides = [1, 1]} : vector<200x8xf32> to vector<50x8xf32>
    %c0_11 = arith.constant 0 : index
    %c8 = arith.constant 8 : index
    %15 = vector.load %arg9[%c0_11, %c8] : memref<50x32xf32, #tpu.memory_space<vmem>>, vector<50x8xf32>
    tpu.vector_store %arg9[%c0_11, %c8], %14 {strides = array<i32>} : memref<50x32xf32, #tpu.memory_space<vmem>>, vector<50x8xf32>,
    %16 = vector.extract_strided_slice %11 {offsets = [100, 0], sizes = [50, 8], strides = [1, 1]} : vector<200x8xf32> to vector<50x8xf32>
    %c0_12 = arith.constant 0 : index
    %c16 = arith.constant 16 : index
    %17 = vector.load %arg9[%c0_12, %c16] : memref<50x32xf32, #tpu.memory_space<vmem>>, vector<50x8xf32>
    tpu.vector_store %arg9[%c0_12, %c16], %16 {strides = array<i32>} : memref<50x32xf32, #tpu.memory_space<vmem>>, vector<50x8xf32>,
    %18 = vector.extract_strided_slice %11 {offsets = [150, 0], sizes = [50, 8], strides = [1, 1]} : vector<200x8xf32> to vector<50x8xf32>
    %c0_13 = arith.constant 0 : index
    %c24 = arith.constant 24 : index
    %19 = vector.load %arg9[%c0_13, %c24] : memref<50x32xf32, #tpu.memory_space<vmem>>, vector<50x8xf32>
    tpu.vector_store %arg9[%c0_13, %c24], %18 {strides = array<i32>} : memref<50x32xf32, #tpu.memory_space<vmem>>, vector<50x8xf32>,
    %c0_14 = arith.constant 0 : index
    %c0_15 = arith.constant 0 : index
    %20 = vector.load %arg2[%c0_14, %c0_15] : memref<128x50xbf16, #tpu.memory_space<vmem>>, vector<128x50xbf16>
    %c0_16 = arith.constant 0 : index
    %c0_17 = arith.constant 0 : index
    %21 = vector.load %arg9[%c0_16, %c0_17] : memref<50x32xf32, #tpu.memory_space<vmem>>, vector<50x32xf32>
    %22 = arith.truncf %21 : vector<50x32xf32> to vector<50x32xbf16>
    %cst_18 = arith.constant dense<0.000000e+00> : vector<128x32xf32>
    %23 = tpu.matmul %20, %22, %cst_18 {dimension_numbers = #tpu.dot_dimension_numbers<[1], [0], [0], [1], [0, 0, 1, 1], [], []>} : vector<128x50xbf16>, vector<50x32xbf16>, vector<128x32xf32> -> vector<128x32xf32>
    %24 = vector.extract_strided_slice %23 {offsets = [0, 0], sizes = [32, 32], strides = [1, 1]} : vector<128x32xf32> to vector<32x32xf32>
    %c0_19 = arith.constant 0 : index
    %c0_20 = arith.constant 0 : index
    %25 = vector.load %arg10[%c0_19, %c0_20] : memref<32x128xf32, #tpu.memory_space<vmem>>, vector<32x32xf32>
    tpu.vector_store %arg10[%c0_19, %c0_20], %24 {strides = array<i32>} : memref<32x128xf32, #tpu.memory_space<vmem>>, vector<32x32xf32>,
    %26 = vector.extract_strided_slice %23 {offsets = [32, 0], sizes = [32, 32], strides = [1, 1]} : vector<128x32xf32> to vector<32x32xf32>
    %c0_21 = arith.constant 0 : index
    %c32 = arith.constant 32 : index
    %27 = vector.load %arg10[%c0_21, %c32] : memref<32x128xf32, #tpu.memory_space<vmem>>, vector<32x32xf32>
    tpu.vector_store %arg10[%c0_21, %c32], %26 {strides = array<i32>} : memref<32x128xf32, #tpu.memory_space<vmem>>, vector<32x32xf32>,
    %28 = vector.extract_strided_slice %23 {offsets = [64, 0], sizes = [32, 32], strides = [1, 1]} : vector<128x32xf32> to vector<32x32xf32>
    %c0_22 = arith.constant 0 : index
    %c64 = arith.constant 64 : index
    %29 = vector.load %arg10[%c0_22, %c64] : memref<32x128xf32, #tpu.memory_space<vmem>>, vector<32x32xf32>
    tpu.vector_store %arg10[%c0_22, %c64], %28 {strides = array<i32>} : memref<32x128xf32, #tpu.memory_space<vmem>>, vector<32x32xf32>,
    %30 = vector.extract_strided_slice %23 {offsets = [96, 0], sizes = [32, 32], strides = [1, 1]} : vector<128x32xf32> to vector<32x32xf32>
    %c0_23 = arith.constant 0 : index
    %c96 = arith.constant 96 : index
    %31 = vector.load %arg10[%c0_23, %c96] : memref<32x128xf32, #tpu.memory_space<vmem>>, vector<32x32xf32>
    tpu.vector_store %arg10[%c0_23, %c96], %30 {strides = array<i32>} : memref<32x128xf32, #tpu.memory_space<vmem>>, vector<32x32xf32>,
    %c0_24 = arith.constant 0 : index
    %c0_25 = arith.constant 0 : index
    %32 = vector.load %arg10[%c0_24, %c0_25] : memref<32x128xf32, #tpu.memory_space<vmem>>, vector<32x128xf32>
    %33 = arith.truncf %32 : vector<32x128xf32> to vector<32x128xbf16>
    %c0_26 = arith.constant 0 : index
    %c0_27 = arith.constant 0 : index
    %34 = vector.load %arg4[%c0_26, %c0_27] : memref<128x16xbf16, #tpu.memory_space<vmem>>, vector<128x16xbf16>
    %cst_28 = arith.constant dense<0.000000e+00> : vector<32x16xf32>
    %35 = tpu.matmul %33, %34, %cst_28 {dimension_numbers = #tpu.dot_dimension_numbers<[1], [0], [0], [1], [0, 0, 1, 1], [], []>} : vector<32x128xbf16>, vector<128x16xbf16>, vector<32x16xf32> -> vector<32x16xf32>
    %36 = vector.extract_strided_slice %0 {offsets = [0, 8], sizes = [1, 16], strides = [1, 1]} : vector<1x66xf32> to vector<1x16xf32>
    %37 = vector.broadcast %36 : vector<1x16xf32> to vector<32x16xf32>
    %38 = arith.addf %35, %37 : vector<32x16xf32>
    %cst_29 = arith.constant 0.000000e+00 : f32
    %39 = vector.broadcast %cst_29 : f32 to vector<32x16xf32>
    %40 = arith.maximumf %38, %39 : vector<32x16xf32>
    %41 = vector.extract_strided_slice %40 {offsets = [0, 0], sizes = [2, 16], strides = [1, 1]} : vector<32x16xf32> to vector<2x16xf32>
    %c0_30 = arith.constant 0 : index
    %c0_31 = arith.constant 0 : index
    %42 = vector.load %arg11[%c0_30, %c0_31] : memref<2x256xf32, #tpu.memory_space<vmem>>, vector<2x16xf32>
    tpu.vector_store %arg11[%c0_30, %c0_31], %41 {strides = array<i32>} : memref<2x256xf32, #tpu.memory_space<vmem>>, vector<2x16xf32>,
    %43 = vector.extract_strided_slice %40 {offsets = [2, 0], sizes = [2, 16], strides = [1, 1]} : vector<32x16xf32> to vector<2x16xf32>
    %c0_32 = arith.constant 0 : index
    %c16_33 = arith.constant 16 : index
    %44 = vector.load %arg11[%c0_32, %c16_33] : memref<2x256xf32, #tpu.memory_space<vmem>>, vector<2x16xf32>
    tpu.vector_store %arg11[%c0_32, %c16_33], %43 {strides = array<i32>} : memref<2x256xf32, #tpu.memory_space<vmem>>, vector<2x16xf32>,
    %45 = vector.extract_strided_slice %40 {offsets = [4, 0], sizes = [2, 16], strides = [1, 1]} : vector<32x16xf32> to vector<2x16xf32>
    %c0_34 = arith.constant 0 : index
    %c32_35 = arith.constant 32 : index
    %46 = vector.load %arg11[%c0_34, %c32_35] : memref<2x256xf32, #tpu.memory_space<vmem>>, vector<2x16xf32>
    tpu.vector_store %arg11[%c0_34, %c32_35], %45 {strides = array<i32>} : memref<2x256xf32, #tpu.memory_space<vmem>>, vector<2x16xf32>,
    %47 = vector.extract_strided_slice %40 {offsets = [6, 0], sizes = [2, 16], strides = [1, 1]} : vector<32x16xf32> to vector<2x16xf32>
    %c0_36 = arith.constant 0 : index
    %c48 = arith.constant 48 : index
    %48 = vector.load %arg11[%c0_36, %c48] : memref<2x256xf32, #tpu.memory_space<vmem>>, vector<2x16xf32>
    tpu.vector_store %arg11[%c0_36, %c48], %47 {strides = array<i32>} : memref<2x256xf32, #tpu.memory_space<vmem>>, vector<2x16xf32>,
    %49 = vector.extract_strided_slice %40 {offsets = [8, 0], sizes = [2, 16], strides = [1, 1]} : vector<32x16xf32> to vector<2x16xf32>
    %c0_37 = arith.constant 0 : index
    %c64_38 = arith.constant 64 : index
    %50 = vector.load %arg11[%c0_37, %c64_38] : memref<2x256xf32, #tpu.memory_space<vmem>>, vector<2x16xf32>
    tpu.vector_store %arg11[%c0_37, %c64_38], %49 {strides = array<i32>} : memref<2x256xf32, #tpu.memory_space<vmem>>, vector<2x16xf32>,
    %51 = vector.extract_strided_slice %40 {offsets = [10, 0], sizes = [2, 16], strides = [1, 1]} : vector<32x16xf32> to vector<2x16xf32>
    %c0_39 = arith.constant 0 : index
    %c80 = arith.constant 80 : index
    %52 = vector.load %arg11[%c0_39, %c80] : memref<2x256xf32, #tpu.memory_space<vmem>>, vector<2x16xf32>
    tpu.vector_store %arg11[%c0_39, %c80], %51 {strides = array<i32>} : memref<2x256xf32, #tpu.memory_space<vmem>>, vector<2x16xf32>,
    %53 = vector.extract_strided_slice %40 {offsets = [12, 0], sizes = [2, 16], strides = [1, 1]} : vector<32x16xf32> to vector<2x16xf32>
    %c0_40 = arith.constant 0 : index
    %c96_41 = arith.constant 96 : index
    %54 = vector.load %arg11[%c0_40, %c96_41] : memref<2x256xf32, #tpu.memory_space<vmem>>, vector<2x16xf32>
    tpu.vector_store %arg11[%c0_40, %c96_41], %53 {strides = array<i32>} : memref<2x256xf32, #tpu.memory_space<vmem>>, vector<2x16xf32>,
    %55 = vector.extract_strided_slice %40 {offsets = [14, 0], sizes = [2, 16], strides = [1, 1]} : vector<32x16xf32> to vector<2x16xf32>
    %c0_42 = arith.constant 0 : index
    %c112 = arith.constant 112 : index
    %56 = vector.load %arg11[%c0_42, %c112] : memref<2x256xf32, #tpu.memory_space<vmem>>, vector<2x16xf32>
    tpu.vector_store %arg11[%c0_42, %c112], %55 {strides = array<i32>} : memref<2x256xf32, #tpu.memory_space<vmem>>, vector<2x16xf32>,
    %57 = vector.extract_strided_slice %40 {offsets = [16, 0], sizes = [2, 16], strides = [1, 1]} : vector<32x16xf32> to vector<2x16xf32>
    %c0_43 = arith.constant 0 : index
    %c128 = arith.constant 128 : index
    %58 = vector.load %arg11[%c0_43, %c128] : memref<2x256xf32, #tpu.memory_space<vmem>>, vector<2x16xf32>
    tpu.vector_store %arg11[%c0_43, %c128], %57 {strides = array<i32>} : memref<2x256xf32, #tpu.memory_space<vmem>>, vector<2x16xf32>,
    %59 = vector.extract_strided_slice %40 {offsets = [18, 0], sizes = [2, 16], strides = [1, 1]} : vector<32x16xf32> to vector<2x16xf32>
    %c0_44 = arith.constant 0 : index
    %c144 = arith.constant 144 : index
    %60 = vector.load %arg11[%c0_44, %c144] : memref<2x256xf32, #tpu.memory_space<vmem>>, vector<2x16xf32>
    tpu.vector_store %arg11[%c0_44, %c144], %59 {strides = array<i32>} : memref<2x256xf32, #tpu.memory_space<vmem>>, vector<2x16xf32>,
    %61 = vector.extract_strided_slice %40 {offsets = [20, 0], sizes = [2, 16], strides = [1, 1]} : vector<32x16xf32> to vector<2x16xf32>
    %c0_45 = arith.constant 0 : index
    %c160 = arith.constant 160 : index
    %62 = vector.load %arg11[%c0_45, %c160] : memref<2x256xf32, #tpu.memory_space<vmem>>, vector<2x16xf32>
    tpu.vector_store %arg11[%c0_45, %c160], %61 {strides = array<i32>} : memref<2x256xf32, #tpu.memory_space<vmem>>, vector<2x16xf32>,
    %63 = vector.extract_strided_slice %40 {offsets = [22, 0], sizes = [2, 16], strides = [1, 1]} : vector<32x16xf32> to vector<2x16xf32>
    %c0_46 = arith.constant 0 : index
    %c176 = arith.constant 176 : index
    %64 = vector.load %arg11[%c0_46, %c176] : memref<2x256xf32, #tpu.memory_space<vmem>>, vector<2x16xf32>
    tpu.vector_store %arg11[%c0_46, %c176], %63 {strides = array<i32>} : memref<2x256xf32, #tpu.memory_space<vmem>>, vector<2x16xf32>,
    %65 = vector.extract_strided_slice %40 {offsets = [24, 0], sizes = [2, 16], strides = [1, 1]} : vector<32x16xf32> to vector<2x16xf32>
    %c0_47 = arith.constant 0 : index
    %c192 = arith.constant 192 : index
    %66 = vector.load %arg11[%c0_47, %c192] : memref<2x256xf32, #tpu.memory_space<vmem>>, vector<2x16xf32>
    tpu.vector_store %arg11[%c0_47, %c192], %65 {strides = array<i32>} : memref<2x256xf32, #tpu.memory_space<vmem>>, vector<2x16xf32>,
    %67 = vector.extract_strided_slice %40 {offsets = [26, 0], sizes = [2, 16], strides = [1, 1]} : vector<32x16xf32> to vector<2x16xf32>
    %c0_48 = arith.constant 0 : index
    %c208 = arith.constant 208 : index
    %68 = vector.load %arg11[%c0_48, %c208] : memref<2x256xf32, #tpu.memory_space<vmem>>, vector<2x16xf32>
    tpu.vector_store %arg11[%c0_48, %c208], %67 {strides = array<i32>} : memref<2x256xf32, #tpu.memory_space<vmem>>, vector<2x16xf32>,
    %69 = vector.extract_strided_slice %40 {offsets = [28, 0], sizes = [2, 16], strides = [1, 1]} : vector<32x16xf32> to vector<2x16xf32>
    %c0_49 = arith.constant 0 : index
    %c224 = arith.constant 224 : index
    %70 = vector.load %arg11[%c0_49, %c224] : memref<2x256xf32, #tpu.memory_space<vmem>>, vector<2x16xf32>
    tpu.vector_store %arg11[%c0_49, %c224], %69 {strides = array<i32>} : memref<2x256xf32, #tpu.memory_space<vmem>>, vector<2x16xf32>,
    %71 = vector.extract_strided_slice %40 {offsets = [30, 0], sizes = [2, 16], strides = [1, 1]} : vector<32x16xf32> to vector<2x16xf32>
    %c0_50 = arith.constant 0 : index
    %c240 = arith.constant 240 : index
    %72 = vector.load %arg11[%c0_50, %c240] : memref<2x256xf32, #tpu.memory_space<vmem>>, vector<2x16xf32>
    tpu.vector_store %arg11[%c0_50, %c240], %71 {strides = array<i32>} : memref<2x256xf32, #tpu.memory_space<vmem>>, vector<2x16xf32>,
    %c0_51 = arith.constant 0 : index
    %c0_52 = arith.constant 0 : index
    %73 = vector.load %arg11[%c0_51, %c0_52] : memref<2x256xf32, #tpu.memory_space<vmem>>, vector<2x256xf32>
    %74 = arith.truncf %73 : vector<2x256xf32> to vector<2x256xbf16>
    %c0_53 = arith.constant 0 : index
    %c0_54 = arith.constant 0 : index
    %75 = vector.load %arg5[%c0_53, %c0_54] : memref<256x32xbf16, #tpu.memory_space<vmem>>, vector<256x32xbf16>
    %cst_55 = arith.constant dense<0.000000e+00> : vector<2x32xf32>
    %76 = tpu.matmul %74, %75, %cst_55 {dimension_numbers = #tpu.dot_dimension_numbers<[1], [0], [0], [1], [0, 0, 1, 1], [], []>} : vector<2x256xbf16>, vector<256x32xbf16>, vector<2x32xf32> -> vector<2x32xf32>
    %77 = vector.extract_strided_slice %0 {offsets = [0, 24], sizes = [1, 32], strides = [1, 1]} : vector<1x66xf32> to vector<1x32xf32>
    %78 = vector.broadcast %77 : vector<1x32xf32> to vector<2x32xf32>
    %79 = arith.addf %76, %78 : vector<2x32xf32>
    %cst_56 = arith.constant 0.000000e+00 : f32
    %80 = vector.broadcast %cst_56 : f32 to vector<2x32xf32>
    %81 = arith.maximumf %79, %80 : vector<2x32xf32>
    %82 = arith.truncf %81 : vector<2x32xf32> to vector<2x32xbf16>
    %c0_57 = arith.constant 0 : index
    %c0_58 = arith.constant 0 : index
    %83 = vector.load %arg6[%c0_57, %c0_58] : memref<32x10xbf16, #tpu.memory_space<vmem>>, vector<32x10xbf16>
    %cst_59 = arith.constant dense<0.000000e+00> : vector<2x10xf32>
    %84 = tpu.matmul %82, %83, %cst_59 {dimension_numbers = #tpu.dot_dimension_numbers<[1], [0], [0], [1], [0, 0, 1, 1], [], []>} : vector<2x32xbf16>, vector<32x10xbf16>, vector<2x10xf32> -> vector<2x10xf32>
    %85 = vector.extract_strided_slice %0 {offsets = [0, 56], sizes = [1, 10], strides = [1, 1]} : vector<1x66xf32> to vector<1x10xf32>
    %86 = vector.broadcast %85 : vector<1x10xf32> to vector<2x10xf32>
    %87 = arith.addf %84, %86 : vector<2x10xf32>
    %c0_60 = arith.constant 0 : index
    %c0_61 = arith.constant 0 : index
    %88 = vector.load %arg8[%c0_60, %c0_61] : memref<2x10xf32, #tpu.memory_space<vmem>>, vector<2x10xf32>
    tpu.vector_store %arg8[%c0_60, %c0_61], %87 {strides = array<i32>} : memref<2x10xf32, #tpu.memory_space<vmem>>, vector<2x10xf32>,
    return
  }
}

</mosaic_0001>

<bundles_post_ra>
// kernel: forward.1
= control target key start
LH: loop header
LB: loop body
LE: loop exit
PB: predicated region body
PF: predicated region fallthrough
CT: control target
= control target key end

     0   :  { %vm126_vm0 = vcmask 523264   ;;  %s2206_s0 = inlined_call_operand.vmem [shape: bf16[128,64], index: 0, kind: input, shape index: {}]   ;;  %s2207_s1 = inlined_call_operand.vmem [shape: bf16[200,128], index: 1, kind: input, shape index: {}]   ;;  %s2208_s2 = inlined_call_operand.vmem [shape: bf16[128,50], index: 2, kind: input, shape index: {}]   ;;  %s2209_s3 = inlined_call_operand.vmem [shape: bf16[64,8], index: 3, kind: input, shape index: {}]   ;;  %s2210_s4 = inlined_call_operand.vmem [shape: bf16[128,16], index: 4, kind: input, shape index: {}]   ;;  %s2211_s5 = inlined_call_operand.vmem [shape: bf16[256,32], index: 5, kind: input, shape index: {}]   ;;  %s2212_s6 = inlined_call_operand.vmem [shape: bf16[32,10], index: 6, kind: input, shape index: {}]   ;;  %s2213_s7 = inlined_call_operand.vmem [shape: f32[1,66], index: 7, kind: input, shape index: {}]   ;;  %s2214_s8 = inlined_call_operand.hbm [shape: f32[2,10], index: 8, kind: output, shape index: {}]  }
   0x1   :  { %v1738_v0 = vld [vmem:[%s2209_s3] sm:$0xff]   ;;  %v1739_v1 = vld [vmem:[%s2209_s3 + $0x8] sm:$0xff]   ;;  %v1740_v2 = vld [vmem:[%s2209_s3 + $0x10] sm:$0xff]  }
   0x2   :  { %1577 = vmatprep.subr.bf16.mxu0 %v1738_v0  ;;  %v1742_v3 = vld [vmem:[%s2206_s0] sm:$0xff]   ;;  %v1741_v4 = vld [vmem:[%s2209_s3 + $0x18] sm:$0xff]   ;;  %v1743_v5 = vld [vmem:[%s2206_s0 + $0x8] sm:$0xff]  }
   0x3   :  { %1578 = vmatpush3.bf16.msra.mxu0 %v1738_v0  ;;  %1585 = vmatprep.mubr.msk.bf16.mxu0 %vm126_vm0, %v1742_v3  ;;  %v1744_v6 = vld [vmem:[%s2206_s0 + $0x10] sm:$0xff]   ;;  %v1745_v7 = vld [vmem:[%s2206_s0 + $0x18] sm:$0xff]   ;;  %v1746_v8 = vld [vmem:[%s2206_s0 + $0x20] sm:$0xff]  }
   0x4   :  { %1579 = vmatprep.subr.bf16.mxu0 %v1739_v1  ;;  %v1747_v9 = vld [vmem:[%s2206_s0 + $0x28] sm:$0xff]   ;;  %v1748_v10 = vld [vmem:[%s2206_s0 + $0x30] sm:$0xff]   ;;  %v1749_v11 = vld [vmem:[%s2206_s0 + $0x38] sm:$0xff]  }
   0x7   :  { %1580 = vmatpush3.bf16.msra.mxu0 %v1739_v1 }
   0x8   :  { %1581 = vmatprep.subr.bf16.mxu0 %v1740_v2 }
   0xb   :  { %1582 = vmatpush3.bf16.msra.mxu0 %v1740_v2 }
   0xc   :  { %1583 = vmatprep.subr.bf16.mxu0 %v1741_v4 }
   0xf   :  { %1584 = vmatpush3.bf16.msra.mxu0 %v1741_v4 }
  0x12   :  { %1586 = vmatmul.mubr.msk.bf16.vlgmr.msra.gmra.mrb[0].mxu0 %vm126_vm0, %v1743_v5 }
  0x13   :  { %1589 = vmatprep.mubr.msk.bf16.mxu0 %vm126_vm0, %v1744_v6 }
  0x1a   :  { %1590 = vmatmul.mubr.msk.bf16.gmra.mrb[4].mxu0 %vm126_vm0, %v1745_v7 }
  0x1b   :  { %1593 = vmatprep.mubr.msk.bf16.mxu0 %vm126_vm0, %v1746_v8 }
  0x22   :  { %1594 = vmatmul.mubr.msk.bf16.gmra.mrb[8].mxu0 %vm126_vm0, %v1747_v9 }
  0x23   :  { %1597 = vmatprep.mubr.msk.bf16.mxu0 %vm126_vm0, %v1748_v10 }
  0x2a   :  { %1598 = vmatmul.mubr.msk.bf16.gmra.mrb[12].mxu0 %vm126_vm0, %v1749_v11 }
  0x2b   :  { %13 = vsyncpa [#allocation6], 0  ;;  %v1822_v12 = vmov 0.0   ;;  %vm1823_vm1 = vmmov 0   ;;  %v1933_v13 = vld [vmem:[%s2213_s7] ss:$0 sm:$0xff] }
  0x2c   :  { %1601 = vmatprep.subr.bf16.mxu1 %v1822_v12  ;;  %1617 = vmatprep.mubr.msk.bf16.mxu1 %vm1823_vm1, %v1822_v12  ;;  %v1750_v6 = vld [vmem:[%s2207_s1] sm:$0xff]   ;;  %v1751_v7 = vld [vmem:[%s2207_s1 + $0x8] sm:$0xff]   ;;  %v1752_v8 = vld [vmem:[%s2207_s1 + $0x10] sm:$0xff]   ;;  %vm509_vm2 = vcmask 64512   ;;  %vm516_vm3 = vcmask 58368   ;;  %s1825_s9 = smov 16  }
  0x2d   :  { %v1753_v9 = vld [vmem:[%s2207_s1 + $0x18] sm:$0xff]   ;;  %v1754_v10 = vld [vmem:[%s2207_s1 + $0x20] sm:$0xff]   ;;  %v1755_v11 = vld [vmem:[%s2207_s1 + $0x28] sm:$0xff]   ;;  %s1826_s10 = smov 24   ;;  %vm696_vm4 = vcmask 408576   ;;  %vm546_vm5 = vcmask 130114  }
  0x2e   :  { %vm548_vm6 = vcmask 130112   ;;  %vm554_vm7 = vcmask 126016   ;;  %vm583_vm8 = vcmask 195716   ;;  %vm585_vm9 = vcmask 195712   ;;  %s1828_s15 = smov 64   ;;  %s1829_s20 = smov 96  }
  0x2f   :  { %vm620_vm10 = vcmask 261318   ;;  %vm622_vm11 = vcmask 261312   ;;  %vm591_vm12 = vcmask 193664   ;;  %vm721_vm13 = vcmask 1040384   ;;  %s1832_s18 = smov 48   ;;  %s1833_s25 = smov 80  }
  0x30   :  { %vm822_vm14 = vcmask 261120   ;;  %vm843_vm15 = vcmask 523520   ;;  %vm864_vm0 = vcmask 785920   ;;  %s1834_s28 = smov 112   ;;  %s1835_s29 = smov 104  }
  0x31   :  { %s1836_s11 = smov 72  }
  0xe5   :  { %v1587_v14 = vpop.f32.mrb[0].mxu0 }
  0xe6   :  { %v194_v15 = vadd.f32 %v1587_v14, %v1933_v13  ;;  %v185_v16 = vpop.f32.mrb[1].mxu0  ;;  %v1756_v14 = vld [vmem:[%s2207_s1 + $0x30] sm:$0xff]  }
  0xe7   :  { %v186_v17 = vadd.f32 %v1933_v13, %v185_v16  ;;  %v1588_v18 = vpop.f32.mrb[2].mxu0  ;;  %v1758_v16 = vld [vmem:[%s2207_s1 + $0x40] sm:$0xff]  }
  0xe8   :  { %v197_v19 = vadd.f32 %v1588_v18, %v1933_v13  ;;  %v188_v20 = vpop.f32.mrb[3].mxu0  ;;  %v250_v22 = vmax.f32 %v194_v15, 0.0  ;;  %v1757_v15 = vld [vmem:[%s2207_s1 + $0x38] sm:$0xff]   ;;  %v1760_v18 = vld [vmem:[%s2207_s1 + $0x50] sm:$0xff]  }
  0xe9   :  { %v189_v21 = vadd.f32 %v1933_v13, %v188_v20  ;;  %v248_v24 = vmax.f32 %v186_v17, 0.0  ;;  %v1759_v17 = vld [vmem:[%s2207_s1 + $0x48] sm:$0xff]   ;;  %v1762_v20 = vld [vmem:[%s2207_s1 + $0x60] ss:$0 sps:$4 sm:$0xff]  }
  0xea   :  { %v251_v23 = vmax.f32 %v197_v19, 0.0  ;;  %v1761_v19 = vld [vmem:[%s2207_s1 + $0x58] sm:$0xff]   ;;  %s1824_s1 = smov 8  }
  0xeb   :  { %v249_v25 = vmax.f32 %v189_v21, 0.0 }
  0xec   :  { %v290_v26 = vpack.c.bf16 %v251_v23, %v250_v22 }
  0xed   :  { %v1591_v27 = vpop.f32.mrb[4].mxu0  ;;  %v289_v28 = vpack.c.bf16 %v249_v25, %v248_v24 }
  0xee   :  { %v210_v29 = vadd.f32 %v1591_v27, %v1933_v13  ;;  %v201_v30 = vpop.f32.mrb[5].mxu0 }
  0xef   :  { %v202_v31 = vadd.f32 %v1933_v13, %v201_v30  ;;  %v1592_v32 = vpop.f32.mrb[6].mxu0  ;;  %1602 = vmatpush3.bf16.msra.mxu1 %v289_v28 }
  0xf0   :  { %v213_v33 = vadd.f32 %v1592_v32, %v1933_v13  ;;  %v204_v34 = vpop.f32.mrb[7].mxu0  ;;  %1603 = vmatprep.subr.bf16.mxu1 %v1822_v12  ;;  %v254_v36 = vmax.f32 %v210_v29, 0.0 }
  0xf1   :  { %v205_v35 = vadd.f32 %v1933_v13, %v204_v34  ;;  %v252_v38 = vmax.f32 %v202_v31, 0.0 }
  0xf2   :  { %v255_v37 = vmax.f32 %v213_v33, 0.0 }
  0xf3   :  { %v253_v39 = vmax.f32 %v205_v35, 0.0  ;;  %1604 = vmatpush3.bf16.msra.mxu1 %v290_v26 }
  0xf4   :  { %v292_v40 = vpack.c.bf16 %v255_v37, %v254_v36  ;;  %1605 = vmatprep.subr.bf16.mxu1 %v1822_v12 }
  0xf5   :  { %v291_v41 = vpack.c.bf16 %v253_v39, %v252_v38  ;;  %v1595_v42 = vpop.f32.mrb[8].mxu0 }
  0xf6   :  { %v226_v43 = vadd.f32 %v1595_v42, %v1933_v13  ;;  %v217_v44 = vpop.f32.mrb[9].mxu0 }
  0xf7   :  { %v218_v45 = vadd.f32 %v1933_v13, %v217_v44  ;;  %v1596_v46 = vpop.f32.mrb[10].mxu0  ;;  %1606 = vmatpush3.bf16.msra.mxu1 %v291_v41 }
  0xf8   :  { %v229_v47 = vadd.f32 %v1596_v46, %v1933_v13  ;;  %v220_v48 = vpop.f32.mrb[11].mxu0  ;;  %1607 = vmatprep.subr.bf16.mxu1 %v1822_v12  ;;  %v258_v50 = vmax.f32 %v226_v43, 0.0 }
  0xf9   :  { %v221_v49 = vadd.f32 %v1933_v13, %v220_v48  ;;  %v256_v52 = vmax.f32 %v218_v45, 0.0 }
  0xfa   :  { %v259_v51 = vmax.f32 %v229_v47, 0.0 }
  0xfb   :  { %v257_v53 = vmax.f32 %v221_v49, 0.0  ;;  %1608 = vmatpush3.bf16.msra.mxu1 %v292_v40 }
  0xfc   :  { %v294_v54 = vpack.c.bf16 %v259_v51, %v258_v50  ;;  %1609 = vmatprep.subr.bf16.mxu1 %v1822_v12 }
  0xfd   :  { %v293_v55 = vpack.c.bf16 %v257_v53, %v256_v52  ;;  %v1599_v56 = vpop.f32.mrb[12].mxu0 }
  0xfe   :  { %v242_v57 = vadd.f32 %v1599_v56, %v1933_v13  ;;  %v233_v58 = vpop.f32.mrb[13].mxu0 }
  0xff   :  { %v234_v59 = vadd.f32 %v1933_v13, %v233_v58  ;;  %v1600_v60 = vpop.f32.mrb[14].mxu0  ;;  %1610 = vmatpush3.bf16.msra.mxu1 %v293_v55 }
 0x100   :  { %v245_v61 = vadd.f32 %v1600_v60, %v1933_v13  ;;  %v236_v62 = vpop.f32.mrb[15].mxu0  ;;  %1611 = vmatprep.subr.bf16.mxu1 %v1822_v12  ;;  %v262_v0 = vmax.f32 %v242_v57, 0.0 }
 0x101   :  { %v237_v63 = vadd.f32 %v1933_v13, %v236_v62  ;;  %v260_v2 = vmax.f32 %v234_v59, 0.0 }
 0x102   :  { %v263_v1 = vmax.f32 %v245_v61, 0.0 }
 0x103   :  { %v261_v3 = vmax.f32 %v237_v63, 0.0  ;;  %1612 = vmatpush3.bf16.msra.mxu1 %v294_v54 }
 0x104   :  { %v296_v4 = vpack.c.bf16 %v263_v1, %v262_v0  ;;  %1613 = vmatprep.subr.bf16.mxu1 %v1822_v12 }
 0x105   :  { %v295_v5 = vpack.c.bf16 %v261_v3, %v260_v2 }
 0x107   :  { %1614 = vmatpush3.bf16.msra.mxu1 %v295_v5 }
 0x108   :  { %1615 = vmatprep.subr.bf16.mxu1 %v1822_v12 }
 0x10b   :  { %1616 = vmatpush3.bf16.msra.mxu1 %v296_v4 }
 0x10e   :  { %1618 = vmatmul.mubr.bf16.vlgmr.msra.gmra.mrb[0].mxu1 %v1750_v6 }
 0x10f   :  { %1621 = vmatprep.mubr.msk.bf16.mxu1 %vm1823_vm1, %v1822_v12 }
 0x116   :  { %1622 = vmatmul.mubr.bf16.gmra.mrb[4].mxu1 %v1751_v7 }
 0x117   :  { %1625 = vmatprep.mubr.msk.bf16.mxu1 %vm1823_vm1, %v1822_v12 }
 0x11e   :  { %1626 = vmatmul.mubr.bf16.gmra.mrb[8].mxu1 %v1752_v8 }
 0x11f   :  { %1629 = vmatprep.mubr.msk.bf16.mxu1 %vm1823_vm1, %v1822_v12 }
 0x126   :  { %1630 = vmatmul.mubr.bf16.gmra.mrb[12].mxu1 %v1753_v9  ;;  %v1763_v9 = vld [vmem:[%s2208_s2] sm:$0xff]  }
 0x127   :  { %1633 = vmatprep.mubr.msk.bf16.mxu1 %vm1823_vm1, %v1822_v12  ;;  %1677 = vmatprep.mubr.msk.bf16.mxu0 %vm696_vm4, %v1763_v9 }
 0x12e   :  { %1634 = vmatmul.mubr.bf16.gmra.mrb[16].mxu1 %v1754_v10 }
 0x12f   :  { %1637 = vmatprep.mubr.msk.bf16.mxu1 %vm1823_vm1, %v1822_v12 }
 0x136   :  { %1638 = vmatmul.mubr.bf16.gmra.mrb[20].mxu1 %v1755_v11 }
 0x137   :  { %1641 = vmatprep.mubr.msk.bf16.mxu1 %vm1823_vm1, %v1822_v12 }
 0x13e   :  { %1642 = vmatmul.mubr.bf16.gmra.mrb[24].mxu1 %v1756_v14 }
 0x13f   :  { %1645 = vmatprep.mubr.msk.bf16.mxu1 %vm1823_vm1, %v1822_v12 }
 0x146   :  { %1646 = vmatmul.mubr.bf16.gmra.mrb[28].mxu1 %v1757_v15 }
 0x147   :  { %1649 = vmatprep.mubr.msk.bf16.mxu1 %vm1823_vm1, %v1822_v12 }
 0x14e   :  { %1650 = vmatmul.mubr.bf16.gmra.mrb[32].mxu1 %v1758_v16 }
 0x14f   :  { %1653 = vmatprep.mubr.msk.bf16.mxu1 %vm1823_vm1, %v1822_v12 }
 0x156   :  { %1654 = vmatmul.mubr.bf16.gmra.mrb[36].mxu1 %v1759_v17 }
 0x157   :  { %1657 = vmatprep.mubr.msk.bf16.mxu1 %vm1823_vm1, %v1822_v12 }
 0x15e   :  { %1658 = vmatmul.mubr.bf16.gmra.mrb[40].mxu1 %v1760_v18 }
 0x15f   :  { %1661 = vmatprep.mubr.msk.bf16.mxu1 %vm1823_vm1, %v1822_v12 }
 0x166   :  { %1662 = vmatmul.mubr.bf16.gmra.mrb[44].mxu1 %v1761_v19 }
 0x167   :  { %1665 = vmatprep.mubr.msk.bf16.mxu1 %vm1823_vm1, %v1822_v12 }
 0x16e   :  { %1666 = vmatmul.mubr.bf16.gmra.mrb[48].mxu1 %v1762_v20 }
 0x1e1   :  { %v407_v21 = vpop.f32.mrb[0].mxu1 }
 0x1e2   :  { %510 = vst.msk [vmem:[#allocation2] sm:$0xff] %vm509_vm2, %v407_v21  ;;  %v1619_v22 = vpop.f32.mrb[1].mxu1 }
 0x1e3   :  { %v410_v23 = vpop.f32.mrb[2].mxu1 }
 0x1e4   :  { %511 = vst.msk [vmem:[#allocation2 + $0x8] sm:$0xff] %vm509_vm2, %v410_v23  ;;  %v1620_v24 = vpop.f32.mrb[3].mxu1 }
 0x1e9   :  { %v415_v25 = vpop.f32.mrb[4].mxu1 }
 0x1ea   :  { %512 = vst.msk [vmem:[#allocation2 + $0x10] sm:$0xff] %vm509_vm2, %v415_v25  ;;  %v1623_v26 = vpop.f32.mrb[5].mxu1 }
 0x1eb   :  { %v418_v27 = vpop.f32.mrb[6].mxu1 }
 0x1ec   :  { %513 = vst.msk [vmem:[#allocation2 + $0x18] sm:$0xff] %vm509_vm2, %v418_v27  ;;  %v1624_v28 = vpop.f32.mrb[7].mxu1 }
 0x1f1   :  { %v423_v29 = vpop.f32.mrb[8].mxu1 }
 0x1f2   :  { %514 = vst.msk [vmem:[#allocation2 + $0x20] sm:$0xff] %vm509_vm2, %v423_v29  ;;  %v1627_v30 = vpop.f32.mrb[9].mxu1 }
 0x1f3   :  { %v426_v31 = vpop.f32.mrb[10].mxu1 }
 0x1f4   :  { %515 = vst.msk [vmem:[#allocation2 + $0x28] sm:$0xff] %vm509_vm2, %v426_v31  ;;  %v1628_v32 = vpop.f32.mrb[11].mxu1  ;;  %vm885_vm2 = vcmask 1048320  }
 0x1f9   :  { %v431_v33 = vpop.f32.mrb[12].mxu1 }
 0x1fa   :  { %517 = vst.msk [vmem:[#allocation2 + $0x30] sm:$0x3] %vm516_vm3, %v431_v33  ;;  %525 = vrot.lane.b32.xlu0 %v431_v33, %s1824_s1  ;;  %v1631_v34 = vpop.f32.mrb[13].mxu1  ;;  %vm1016_vm3 = vcmask 123904  }
 0x1fb   :  { %v434_v35 = vpop.f32.mrb[14].mxu1 }
 0x1fc   :  { %v1632_v36 = vpop.f32.mrb[15].mxu1 }
 0x1fe   :  { %527 = vrot.lane.b32.xlu0 %v434_v35, %s1824_s1 }
 0x201   :  { %v439_v37 = vpop.f32.mrb[16].mxu1 }
 0x202   :  { %529 = vrot.lane.b32.xlu1 %v439_v37, %s1824_s1  ;;  %v1635_v38 = vpop.f32.mrb[17].mxu1 }
 0x203   :  { %v442_v39 = vpop.f32.mrb[18].mxu1 }
 0x204   :  { %v1636_v40 = vpop.f32.mrb[19].mxu1 }
 0x206   :  { %531 = vrot.lane.b32.xlu1 %v442_v39, %s1824_s1 }
 0x209   :  { %v447_v41 = vpop.f32.mrb[20].mxu1 }
 0x20a   :  { %533 = vrot.lane.b32.xlu0 %v447_v41, %s1824_s1  ;;  %v1639_v42 = vpop.f32.mrb[21].mxu1 }
 0x20b   :  { %v450_v43 = vpop.f32.mrb[22].mxu1 }
 0x20c   :  { %535 = vrot.lane.b32.xlu1 %v450_v43, %s1824_s1  ;;  %v1640_v44 = vpop.f32.mrb[23].mxu1 }
 0x211   :  { %v455_v45 = vpop.f32.mrb[24].mxu1 }
 0x212   :  { %537 = vrot.lane.b32.xlu0 %v455_v45, %s1824_s1  ;;  %562 = vrot.lane.b32.xlu1 %v455_v45, %s1825_s9  ;;  %v1643_v46 = vpop.f32.mrb[25].mxu1  ;;  %v1764_v45 = vld [vmem:[%s2208_s2 + $0x8] sm:$0xff]  }
 0x213   :  { %v458_v47 = vpop.f32.mrb[26].mxu1  ;;  %v1765_v46 = vld [vmem:[%s2208_s2 + $0x10] sm:$0xff]  }
 0x214   :  { %v1644_v48 = vpop.f32.mrb[27].mxu1 }
 0x215   :  { %v1767_v48 = vld [vmem:[%s2208_s2 + $0x20] sm:$0xff]  }
 0x216   :  { %564 = vrot.lane.b32.xlu0 %v458_v47, %s1825_s9  ;;  %v1766_v47 = vld [vmem:[%s2208_s2 + $0x18] sm:$0xff]  }
 0x219   :  { %v463_v49 = vpop.f32.mrb[28].mxu1 }
 0x21a   :  { %566 = vrot.lane.b32.xlu1 %v463_v49, %s1825_s9  ;;  %v1647_v50 = vpop.f32.mrb[29].mxu1  ;;  %v1768_v49 = vld [vmem:[%s2208_s2 + $0x28] sm:$0xff]  }
 0x21b   :  { %v466_v51 = vpop.f32.mrb[30].mxu1  ;;  %v1769_v50 = vld [vmem:[%s2208_s2 + $0x30] sm:$0xff]  }
 0x21c   :  { %v1648_v52 = vpop.f32.mrb[31].mxu1 }
 0x21d   :  { %v1771_v52 = vld [vmem:[%s2210_s4] sm:$0xff]  }
 0x21e   :  { %568 = vrot.lane.b32.xlu1 %v466_v51, %s1825_s9  ;;  %v1770_v51 = vld [vmem:[%s2208_s2 + $0x38] sm:$0xff]  }
 0x221   :  { %v471_v53 = vpop.f32.mrb[32].mxu1 }
 0x222   :  { %570 = vrot.lane.b32.xlu0 %v471_v53, %s1825_s9  ;;  %v1651_v54 = vpop.f32.mrb[33].mxu1  ;;  %v1772_v53 = vld [vmem:[%s2210_s4 + $0x8] sm:$0xff]  }
 0x223   :  { %v474_v55 = vpop.f32.mrb[34].mxu1 }
 0x224   :  { %572 = vrot.lane.b32.xlu1 %v474_v55, %s1825_s9  ;;  %v1652_v56 = vpop.f32.mrb[35].mxu1 }
 0x229   :  { %v479_v57 = vpop.f32.mrb[36].mxu1 }
 0x22a   :  { %599 = vrot.lane.b32.xlu0 %v479_v57, %s1826_s10  ;;  %v1655_v58 = vpop.f32.mrb[37].mxu1 }
 0x22b   :  { %v482_v59 = vpop.f32.mrb[38].mxu1 }
 0x22c   :  { %601 = vrot.lane.b32.xlu1 %v482_v59, %s1826_s10  ;;  %v1656_v60 = vpop.f32.mrb[39].mxu1  ;;  %v1774_v59 = vld [vmem:[%s2210_s4 + $0x18] sm:$0xff]  }
 0x22e   :  { %574 = vrot.lane.b32.xlu0 %v479_v57, %s1825_s9  ;;  %v1773_v57 = vld [vmem:[%s2210_s4 + $0x10] sm:$0xff]  }
 0x231   :  { %v487_v61 = vpop.f32.mrb[40].mxu1 }
 0x232   :  { %603 = vrot.lane.b32.xlu0 %v487_v61, %s1826_s10  ;;  %v1659_v62 = vpop.f32.mrb[41].mxu1 }
 0x233   :  { %v490_v63 = vpop.f32.mrb[42].mxu1 }
 0x234   :  { %605 = vrot.lane.b32.xlu1 %v490_v63, %s1826_s10  ;;  %v1660_v0 = vpop.f32.mrb[43].mxu1  ;;  %v1775_v63 = vld [vmem:[%s2210_s4 + $0x20] sm:$0xff]  }
 0x239   :  { %v495_v1 = vpop.f32.mrb[44].mxu1 }
 0x23a   :  { %607 = vrot.lane.b32.xlu0 %v495_v1, %s1826_s10  ;;  %v1663_v2 = vpop.f32.mrb[45].mxu1  ;;  %v1776_v1 = vld [vmem:[%s2210_s4 + $0x28] sm:$0xff]  }
 0x23b   :  { %v498_v3 = vpop.f32.mrb[46].mxu1 }
 0x23c   :  { %609 = vrot.lane.b32.xlu1 %v498_v3, %s1826_s10  ;;  %v1664_v4 = vpop.f32.mrb[47].mxu1 }
 0x241   :  { %v503_v5 = vpop.f32.mrb[48].mxu1 }
 0x242   :  { %611 = vrot.lane.b32.xlu0 %v503_v5, %s1826_s10  ;;  %v1667_v6 = vpop.f32.mrb[49].mxu1  ;;  %s1827_s10 = smov 32  }
 0x243   :  { %v506_v7 = vpop.f32.mrb[50].mxu1  ;;  %v1777_v6 = vld [vmem:[%s2210_s4 + $0x30] sm:$0xff]  }
 0x244   :  { %v1668_v8 = vpop.f32.mrb[51].mxu1  ;;  %v1778_v7 = vld [vmem:[%s2210_s4 + $0x38] sm:$0xff]   ;;  %s1830_s4 = smov 120  }
 0x26c   :  { %v526_v10 = vpop.permute.xlu0 %525 }
 0x26d   :  { %547 = vst.msk [vmem:[#allocation2 - $0x2] sm:$0xfc] %vm546_vm5, %v526_v10  ;;  %vm1043_vm5 = vcmask 386304  }
 0x270   :  { %v528_v11 = vpop.permute.xlu0 %527 }
 0x271   :  { %549 = vst.msk [vmem:[#allocation2 + $0x6] sm:$0xff] %vm548_vm6, %v528_v11 }
 0x274   :  { %v530_v14 = vpop.permute.xlu1 %529 }
 0x275   :  { %550 = vst.msk [vmem:[#allocation2 + $0xe] sm:$0xff] %vm548_vm6, %v530_v14 }
 0x278   :  { %v532_v15 = vpop.permute.xlu1 %531 }
 0x279   :  { %551 = vst.msk [vmem:[#allocation2 + $0x16] sm:$0xff] %vm548_vm6, %v532_v15 }
 0x27c   :  { %v534_v16 = vpop.permute.xlu0 %533 }
 0x27d   :  { %552 = vst.msk [vmem:[#allocation2 + $0x1e] sm:$0xff] %vm548_vm6, %v534_v16 }
 0x27e   :  { %v536_v17 = vpop.permute.xlu1 %535 }
 0x27f   :  { %553 = vst.msk [vmem:[#allocation2 + $0x26] sm:$0xff] %vm548_vm6, %v536_v17  ;;  %vm1049_vm6 = vcmask 517504  }
 0x284   :  { %v538_v18 = vpop.permute.xlu0 %537  ;;  %v563_v19 = vpop.permute.xlu1 %562 }
 0x285   :  { %555 = vst.msk [vmem:[#allocation2 + $0x2e] sm:$0xf] %vm554_vm7, %v538_v18  ;;  %vm1062_vm7 = vcmask 648704  }
 0x286   :  { %584 = vst.msk [vmem:[#allocation2 - $0x4] sm:$0xf0] %vm583_vm8, %v563_v19  ;;  %vm1068_vm8 = vcmask 779904  }
 0x288   :  { %v565_v20 = vpop.permute.xlu0 %564 }
 0x289   :  { %586 = vst.msk [vmem:[#allocation2 + $0x4] sm:$0xff] %vm585_vm9, %v565_v20 }
 0x28c   :  { %v567_v21 = vpop.permute.xlu1 %566 }
 0x28d   :  { %587 = vst.msk [vmem:[#allocation2 + $0xc] sm:$0xff] %vm585_vm9, %v567_v21 }
 0x290   :  { %v569_v22 = vpop.permute.xlu1 %568 }
 0x291   :  { %588 = vst.msk [vmem:[#allocation2 + $0x14] sm:$0xff] %vm585_vm9, %v569_v22 }
 0x294   :  { %v571_v23 = vpop.permute.xlu0 %570 }
 0x295   :  { %589 = vst.msk [vmem:[#allocation2 + $0x1c] sm:$0xff] %vm585_vm9, %v571_v23 }
 0x296   :  { %v573_v24 = vpop.permute.xlu1 %572 }
 0x297   :  { %590 = vst.msk [vmem:[#allocation2 + $0x24] sm:$0xff] %vm585_vm9, %v573_v24  ;;  %vm1081_vm9 = vcmask 911104  }
 0x29c   :  { %v600_v25 = vpop.permute.xlu0 %599 }
 0x29d   :  { %621 = vst.msk [vmem:[#allocation2 - $0x6] sm:$0xc0] %vm620_vm10, %v600_v25  ;;  %vm1087_vm10 = vcmask 1042304  }
 0x29e   :  { %v602_v26 = vpop.permute.xlu1 %601 }
 0x29f   :  { %623 = vst.msk [vmem:[#allocation2 + $0x2] sm:$0xff] %vm622_vm11, %v602_v26 }
 0x2a0   :  { %v575_v27 = vpop.permute.xlu0 %574 }
 0x2a1   :  { %592 = vst.msk [vmem:[#allocation2 + $0x2c] sm:$0x3f] %vm591_vm12, %v575_v27 }
 0x2a4   :  { %v604_v28 = vpop.permute.xlu0 %603 }
 0x2a5   :  { %624 = vst.msk [vmem:[#allocation2 + $0xa] sm:$0xff] %vm622_vm11, %v604_v28 }
 0x2a6   :  { %v606_v29 = vpop.permute.xlu1 %605  ;;  %v645_v31 = vld [vmem:[#allocation2] sm:$0xff] }
 0x2a7   :  { %625 = vst.msk [vmem:[#allocation2 + $0x12] sm:$0xff] %vm622_vm11, %v606_v29 }
 0x2ac   :  { %v608_v30 = vpop.permute.xlu0 %607  ;;  %v646_v32 = vld [vmem:[#allocation2 + $0x8] sm:$0xff] }
 0x2ad   :  { %626 = vst.msk [vmem:[#allocation2 + $0x1a] sm:$0xff] %vm622_vm11, %v608_v30  ;;  %v652_v33 = vpack.c.bf16 %v646_v32, %v645_v31  ;;  %v1831_v32 = vmov 1983009808  }
 0x2ae   :  { %v610_v34 = vpop.permute.xlu1 %609  ;;  %v647_v36 = vld [vmem:[#allocation2 + $0x10] sm:$0xff] }
 0x2af   :  { %627 = vst.msk [vmem:[#allocation2 + $0x22] sm:$0xff] %vm622_vm11, %v610_v34  ;;  %1669 = vmatprep.subr.bf16.mxu0 %v652_v33  ;;  %v1022_v34 = vlaneseq }
 0x2b0   :  { %1670 = vmatpush3.bf16.msra.mxu0 %v652_v33  ;;  %v1020_v33 = vunpack.c.l.s4 %v1831_v32 }
 0x2b4   :  { %v612_v35 = vpop.permute.xlu0 %611  ;;  %v648_v37 = vld [vmem:[#allocation2 + $0x18] sm:$0xff] }
 0x2b5   :  { %628 = vst.msk [vmem:[#allocation2 + $0x2a] sm:$0xff] %vm622_vm11, %v612_v35  ;;  %v653_v38 = vpack.c.bf16 %v648_v37, %v647_v36  ;;  %v1021_v35 = vunpack.c.0.s8 %v1020_v33  ;;  %v1023_v36 = vshrl.u32 %v1022_v34, 7 }
 0x2b6   :  { %v649_v39 = vld [vmem:[#allocation2 + $0x20] sm:$0xff] }
 0x2b7   :  { %1671 = vmatprep.subr.bf16.mxu0 %v653_v38 }
 0x2b8   :  { %1672 = vmatpush3.bf16.msra.mxu0 %v653_v38 }
 0x2bc   :  { %v650_v40 = vld [vmem:[#allocation2 + $0x28] sm:$0xff]  ;;  %v651_v41 = vld [vmem:[#allocation2 + $0x30] sm:$0x3] }
 0x2bd   :  { %v654_v42 = vpack.c.bf16 %v650_v40, %v649_v39  ;;  %v655_v43 = vpack.c.bf16 %v651_v41, %v651_v41  ;;  %v1779_v39 = vld [vmem:[%s2211_s5 + $0x40] sm:$0xff]  }
 0x2bf   :  { %1673 = vmatprep.subr.bf16.mxu0 %v654_v42  ;;  %v723_v44 = vsel %vm721_vm13, %v655_v43, 0 }
 0x2c0   :  { %1674 = vmatpush3.bf16.msra.mxu0 %v654_v42  ;;  %v2116_v42 = vsub.s32 %v1021_v35, %v1023_v36 }
 0x2c1   :  { %1721 = vmatprep.subr.msk.bf16.mxu0 %vm721_vm13, %v655_v43  ;;  %v1780_v43 = vld [vmem:[%s2211_s5] sm:$0xff]  }
 0x2c4   :  { %1676 = vmatpush3.bf16.msra.mxu0 %v723_v44 }
 0x2c5   :  { %1693 = vmatprep.subr.bf16.mxu0 %v1771_v52 }
 0x2c7   :  { %1678 = vmatmul.mubr.msk.bf16.vlgmr.msra.gmra.mrb[16].mxu0 %vm696_vm4, %v1764_v45 }
 0x2c8   :  { %1681 = vmatprep.mubr.msk.bf16.mxu0 %vm696_vm4, %v1765_v46  ;;  %1694 = vmatpush3.bf16.msra.mxu0 %v1771_v52 }
 0x2c9   :  { %1695 = vmatprep.subr.bf16.mxu0 %v1772_v53 }
 0x2cc   :  { %1696 = vmatpush3.bf16.msra.mxu0 %v1772_v53 }
 0x2cd   :  { %1697 = vmatprep.subr.bf16.mxu0 %v1773_v57 }
 0x2cf   :  { %1682 = vmatmul.mubr.msk.bf16.gmra.mrb[20].mxu0 %vm696_vm4, %v1766_v47 }
 0x2d0   :  { %1685 = vmatprep.mubr.msk.bf16.mxu0 %vm696_vm4, %v1767_v48  ;;  %1698 = vmatpush3.bf16.msra.mxu0 %v1773_v57 }
 0x2d1   :  { %1699 = vmatprep.subr.bf16.mxu0 %v1774_v59 }
 0x2d4   :  { %1700 = vmatpush3.bf16.msra.mxu0 %v1774_v59  ;;  %v1783_v59 = vld [vmem:[%s2211_s5 + $0x50] sm:$0xff]  }
 0x2d5   :  { %1701 = vmatprep.subr.bf16.mxu0 %v1775_v63 }
 0x2d7   :  { %1686 = vmatmul.mubr.msk.bf16.gmra.mrb[24].mxu0 %vm696_vm4, %v1768_v49  ;;  %v1781_v49 = vld [vmem:[%s2211_s5 + $0x48] sm:$0xff]  }
 0x2d8   :  { %1689 = vmatprep.mubr.msk.bf16.mxu0 %vm696_vm4, %v1769_v50  ;;  %1702 = vmatpush3.bf16.msra.mxu0 %v1775_v63  ;;  %v1782_v50 = vld [vmem:[%s2211_s5 + $0x8] sm:$0xff]  }
 0x2d9   :  { %1703 = vmatprep.subr.bf16.mxu0 %v1776_v1 }
 0x2dc   :  { %1704 = vmatpush3.bf16.msra.mxu0 %v1776_v1  ;;  %v1785_v1 = vld [vmem:[%s2211_s5 + $0x58] sm:$0xff]  }
 0x2dd   :  { %1705 = vmatprep.subr.bf16.mxu0 %v1777_v6 }
 0x2df   :  { %1690 = vmatmul.mubr.msk.bf16.gmra.mrb[28].mxu0 %vm696_vm4, %v1770_v51  ;;  %vm1030_vm4 = vcmask 255104  }
 0x2e0   :  { %1706 = vmatpush3.bf16.msra.mxu0 %v1777_v6  ;;  %v1788_v6 = vld [vmem:[%s2211_s5 + $0x20] sm:$0xff]  }
 0x2e1   :  { %1707 = vmatprep.subr.bf16.mxu0 %v1778_v7 }
 0x2e4   :  { %1708 = vmatpush3.bf16.msra.mxu0 %v1778_v7 }
 0x2e5   :  { %1552 = vmatprep.subr.bf16.mxu0 %v1779_v39 }
 0x39a   :  { %v1679_v54 = vpop.f32.mrb[16].mxu0 }
 0x39b   :  { %825 = vst.msk [vmem:[#allocation3 + $0x10] sm:$0xff] %vm822_vm14, %v1679_v54  ;;  %v759_v55 = vpop.f32.mrb[17].mxu0 }
 0x39c   :  { %823 = vst.msk [vmem:[#allocation3] sm:$0xff] %vm822_vm14, %v759_v55  ;;  %v1680_v56 = vpop.f32.mrb[18].mxu0 }
 0x39d   :  { %826 = vst.msk [vmem:[#allocation3 + $0x18] sm:$0xff] %vm822_vm14, %v1680_v56  ;;  %v762_v58 = vpop.f32.mrb[19].mxu0 }
 0x39e   :  { %824 = vst.msk [vmem:[#allocation3 + $0x8] sm:$0xff] %vm822_vm14, %v762_v58 }
 0x3a2   :  { %v1683_v60 = vpop.f32.mrb[20].mxu0 }
 0x3a3   :  { %v775_v61 = vpop.f32.mrb[21].mxu0  ;;  %835 = vrot.lane.b32.xlu1 %v1683_v60, %s1827_s10  ;;  %v1784_v60 = vld [vmem:[%s2211_s5 + $0x10] sm:$0xff]  }
 0x3a4   :  { %v1684_v62 = vpop.f32.mrb[22].mxu0 }
 0x3a5   :  { %837 = vrot.lane.b32.xlu0 %v1684_v62, %s1827_s10  ;;  %v778_v0 = vpop.f32.mrb[23].mxu0 }
 0x3a7   :  { %831 = vrot.lane.b32.xlu1 %v775_v61, %s1827_s10 }
 0x3a9   :  { %833 = vrot.lane.b32.xlu0 %v778_v0, %s1827_s10 }
 0x3aa   :  { %v1687_v2 = vpop.f32.mrb[24].mxu0 }
 0x3ab   :  { %v791_v3 = vpop.f32.mrb[25].mxu0  ;;  %856 = vrot.lane.b32.xlu1 %v1687_v2, %s1828_s15  ;;  %v1786_v2 = vld [vmem:[%s2211_s5 + $0x18] sm:$0xff]  }
 0x3ac   :  { %v1688_v4 = vpop.f32.mrb[26].mxu0 }
 0x3ad   :  { %858 = vrot.lane.b32.xlu0 %v1688_v4, %s1828_s15  ;;  %v794_v5 = vpop.f32.mrb[27].mxu0 }
 0x3af   :  { %852 = vrot.lane.b32.xlu1 %v791_v3, %s1828_s15 }
 0x3b1   :  { %854 = vrot.lane.b32.xlu0 %v794_v5, %s1828_s15  ;;  %v1787_v5 = vld [vmem:[%s2211_s5 + $0x60] sm:$0xff]  }
 0x3b2   :  { %v1691_v8 = vpop.f32.mrb[28].mxu0 }
 0x3b3   :  { %v807_v9 = vpop.f32.mrb[29].mxu0 }
 0x3b4   :  { %v1692_v10 = vpop.f32.mrb[30].mxu0  ;;  %873 = vrot.lane.b32.xlu1 %v807_v9, %s1829_s20  ;;  %v1789_v9 = vld [vmem:[%s2211_s5 + $0x68] sm:$0xff]  }
 0x3b5   :  { %v810_v11 = vpop.f32.mrb[31].mxu0 }
 0x3b6   :  { %875 = vrot.lane.b32.xlu0 %v810_v11, %s1829_s20  ;;  %v1791_v11 = vld [vmem:[%s2211_s5 + $0x70] sm:$0xff]  }
 0x3b8   :  { %877 = vrot.lane.b32.xlu1 %v1691_v8, %s1829_s20 }
 0x3ba   :  { %879 = vrot.lane.b32.xlu0 %v1692_v10, %s1829_s20  ;;  %v1790_v10 = vld [vmem:[%s2211_s5 + $0x28] sm:$0xff]  }
 0x3bc   :  { %960 = vrot.lane.b32.xlu1 %v1933_v13, %s1830_s4 }
 0x415   :  { %v836_v14 = vpop.permute.xlu1 %835 }
 0x416   :  { %846 = vst.msk [vmem:[#allocation3 + $0x10] sm:$0xff] %vm843_vm15, %v836_v14 }
 0x417   :  { %v838_v15 = vpop.permute.xlu0 %837 }
 0x418   :  { %847 = vst.msk [vmem:[#allocation3 + $0x18] sm:$0xff] %vm843_vm15, %v838_v15 }
 0x419   :  { %v832_v16 = vpop.permute.xlu1 %831 }
 0x41a   :  { %844 = vst.msk [vmem:[#allocation3] sm:$0xff] %vm843_vm15, %v832_v16  ;;  %v1792_v16 = vld [vmem:[%s2211_s5 + $0x30] sm:$0xff]  }
 0x41b   :  { %v834_v17 = vpop.permute.xlu0 %833 }
 0x41c   :  { %845 = vst.msk [vmem:[#allocation3 + $0x8] sm:$0xff] %vm843_vm15, %v834_v17 }
 0x41d   :  { %v857_v18 = vpop.permute.xlu1 %856 }
 0x41e   :  { %867 = vst.msk [vmem:[#allocation3 + $0x10] sm:$0xff] %vm864_vm0, %v857_v18 }
 0x41f   :  { %v859_v19 = vpop.permute.xlu0 %858 }
 0x420   :  { %868 = vst.msk [vmem:[#allocation3 + $0x18] sm:$0xff] %vm864_vm0, %v859_v19  ;;  %v1793_v19 = vld [vmem:[%s2211_s5 + $0x78] sm:$0xff]  }
 0x421   :  { %v853_v20 = vpop.permute.xlu1 %852 }
 0x422   :  { %865 = vst.msk [vmem:[#allocation3] sm:$0xff] %vm864_vm0, %v853_v20 }
 0x423   :  { %v855_v21 = vpop.permute.xlu0 %854 }
 0x424   :  { %866 = vst.msk [vmem:[#allocation3 + $0x8] sm:$0xff] %vm864_vm0, %v855_v21  ;;  %v1794_v21 = vld [vmem:[%s2211_s5 + $0x38] sm:$0xff]  }
 0x426   :  { %v874_v22 = vpop.permute.xlu1 %873 }
 0x427   :  { %886 = vst.msk [vmem:[#allocation3] sm:$0xff] %vm885_vm2, %v874_v22 }
 0x428   :  { %v876_v23 = vpop.permute.xlu0 %875 }
 0x429   :  { %887 = vst.msk [vmem:[#allocation3 + $0x8] sm:$0xff] %vm885_vm2, %v876_v23 }
 0x42a   :  { %v878_v24 = vpop.permute.xlu1 %877 }
 0x42b   :  { %888 = vst.msk [vmem:[#allocation3 + $0x10] sm:$0xff] %vm885_vm2, %v878_v24 }
 0x42c   :  { %v880_v25 = vpop.permute.xlu0 %879 }
 0x42d   :  { %889 = vst.msk [vmem:[#allocation3 + $0x18] sm:$0xff] %vm885_vm2, %v880_v25 }
 0x42e   :  { %v890_v26 = vld [vmem:[#allocation3] sm:$0xff]  ;;  %v961_v37 = vpop.permute.xlu1 %960 }
 0x430   :  { %v891_v27 = vld [vmem:[#allocation3 + $0x8] sm:$0xff] }
 0x431   :  { %v894_v28 = vpack.c.bf16 %v891_v27, %v890_v26 }
 0x432   :  { %v892_v29 = vld [vmem:[#allocation3 + $0x10] sm:$0xff] }
 0x433   :  { %1709 = vmatprep.mubr.bf16.mxu0 %v894_v28 }
 0x434   :  { %v893_v30 = vld [vmem:[#allocation3 + $0x18] sm:$0xff] }
 0x435   :  { %v895_v31 = vpack.c.bf16 %v893_v30, %v892_v29 }
 0x437   :  { %1710 = vmatmul.mubr.bf16.vlgmr.msra.gmra.mrb[32].mxu0 %v895_v31 }
 0x438   :  { %1553 = vmatpush3.bf16.msra.mxu0 %v1780_v43  ;;  %v1796_v43 = vld [vmem:[%s2212_s6 + $0x8] sm:$0xff]  }
 0x439   :  { %1554 = vmatprep.subr.bf16.mxu0 %v1781_v49 }
 0x43c   :  { %1555 = vmatpush3.bf16.msra.mxu0 %v1782_v50 }
 0x43d   :  { %1556 = vmatprep.subr.bf16.mxu0 %v1783_v59 }
 0x440   :  { %1557 = vmatpush3.bf16.msra.mxu0 %v1784_v60 }
 0x441   :  { %1558 = vmatprep.subr.bf16.mxu0 %v1785_v1 }
 0x444   :  { %1559 = vmatpush3.bf16.msra.mxu0 %v1786_v2 }
 0x445   :  { %1560 = vmatprep.subr.bf16.mxu0 %v1787_v5 }
 0x448   :  { %1561 = vmatpush3.bf16.msra.mxu0 %v1788_v6 }
 0x449   :  { %1562 = vmatprep.subr.bf16.mxu0 %v1789_v9 }
 0x44c   :  { %1563 = vmatpush3.bf16.msra.mxu0 %v1790_v10 }
 0x44d   :  { %1564 = vmatprep.subr.bf16.mxu0 %v1791_v11 }
 0x450   :  { %1565 = vmatpush3.bf16.msra.mxu0 %v1792_v16 }
 0x451   :  { %1566 = vmatprep.subr.bf16.mxu0 %v1793_v19 }
 0x454   :  { %1567 = vmatpush3.bf16.msra.mxu0 %v1794_v21 }
 0x455   :  { %1713 = vmatprep.subr.bf16.mxu0 %v1822_v12 }
 0x50a   :  { %v1711_v38 = vpop.f32.mrb[32].mxu0 }
 0x50b   :  { %v1006_v40 = vadd.f32 %v1711_v38, %v961_v37  ;;  %v997_v41 = vpop.f32.mrb[33].mxu0 }
 0x50c   :  { %v998_v44 = vadd.f32 %v997_v41, %v961_v37  ;;  %v1712_v45 = vpop.f32.mrb[34].mxu0 }
 0x50d   :  { %v1014_v46 = vmax.f32 %v1006_v40, 0.0  ;;  %v1000_v47 = vpop.f32.mrb[35].mxu0  ;;  %v1009_v54 = vadd.f32 %v1712_v45, %v961_v37 }
 0x50e   :  { %v1012_v48 = vmax.f32 %v998_v44, 0.0  ;;  %v1001_v57 = vadd.f32 %v1000_v47, %v961_v37  ;;  %v1797_v44 = vld [vmem:[%s2213_s7] ss:$0 sm:$0xff] }
 0x50f   :  { %v1097_v51 = vrot.slane %v1014_v46, %v2116_v42  ;;  %1089 = vst.msk [vmem:[#allocation4 + $0x2] sm:$0x3] %vm1016_vm3, %v1014_v46  ;;  %v1103_v53 = vcombine.high %v1014_v46, %v1014_v46  ;;  %v1015_v61 = vmax.f32 %v1009_v54, 0.0 }
 0x510   :  { %v1025_v52 = vrot.slane %v1012_v48, %v2116_v42  ;;  %1017 = vst.msk [vmem:[#allocation4] sm:$0x3] %vm1016_vm3, %v1012_v48  ;;  %v1032_v56 = vcombine.high %v1012_v48, %v1012_v48  ;;  %v1013_v63 = vmax.f32 %v1001_v57, 0.0 }
 0x511   :  { %v1098_v55 = vcombine.high %v1097_v51, %v1097_v51  ;;  %v1110_v62 = vrot.slane %v1103_v53, %v2116_v42  ;;  %v1127_v3 = vrot.slane %v1015_v61, %v2116_v42  ;;  %v1137_v14 = vcombine.high %v1015_v61, %v1015_v61 }
 0x512   :  { %v1026_v58 = vcombine.high %v1025_v52, %v1025_v52  ;;  %v1039_v0 = vrot.slane %v1032_v56, %v2116_v42  ;;  %v1058_v4 = vrot.slane %v1013_v63, %v2116_v42  ;;  %v1070_v17 = vcombine.high %v1013_v63, %v1013_v63 }
 0x513   :  { %1099 = vrot.lane.b32.xlu1 %v1098_v55, %s1825_s9  ;;  %v1115_v7 = vcombine.high %v1110_v62, %v1110_v62  ;;  %v1132_v15 = vcombine.high %v1127_v3, %v1127_v3  ;;  %v1144_v20 = vrot.slane %v1137_v14, %v2116_v42 }
 0x514   :  { %1027 = vrot.lane.b32.xlu0 %v1026_v58, %s1825_s9  ;;  %v1045_v8 = vcombine.high %v1039_v0, %v1039_v0  ;;  %v1064_v18 = vcombine.high %v1058_v4, %v1058_v4  ;;  %v1077_v22 = vrot.slane %v1070_v17, %v2116_v42  ;;  %v1795_v42 = vld [vmem:[%s2212_s6] sm:$0xff]   ;;  %s1837_s6 = smov [#allocation5]  }
 0x515   :  { %v1149_v23 = vcombine.high %v1144_v20, %v1144_v20  ;;  %s1411_s12 = sshll.u32 %s1837_s6, 4  ;;  %s1412_s12 = int_to_ptr.vmem [resolvable:$true] %s1411_s12 }
 0x516   :  { %v1083_v24 = vcombine.high %v1077_v22, %v1077_v22  ;;  %s1798_s7 = scalar_lea.vmem %s1412_s12, 32  ;;  %p1803_p1 = scmp.lt.s32.totalorder %s1412_s12, %s1412_s12 }
 0x517   :  { %1111 = vrot.lane.b32.xlu1 %v1110_v62, %s1827_s10  ;;  %p1799_p0 = scmp.ne.s32.totalorder %s1412_s12, %s1798_s7  ;;  %p1804_p2 = scmp.lt.s32.totalorder %s1798_s7, %s1798_s7 }
 0x518   :  { %1040 = vrot.lane.b32.xlu0 %v1039_v0, %s1827_s10 }
 0x519   :  { %p1805_p3 = por %p1804_p2, %p1803_p1 }
 0x51b   :  { %1128 = vrot.lane.b32.xlu1 %v1127_v3, %s1828_s15  ;;  %p1806_p4 = pnand %p1805_p3, %p1799_p0 }
 0x51c   :  { %1059 = vrot.lane.b32.xlu0 %v1058_v4, %s1828_s15 }
 0x51f   :  { %1116 = vrot.lane.b32.xlu1 %v1115_v7, %s1832_s18 }
 0x520   :  { %1046 = vrot.lane.b32.xlu0 %v1045_v8, %s1832_s18 }
 0x523   :  { %1133 = vrot.lane.b32.xlu1 %v1132_v15, %s1833_s25 }
 0x524   :  { %1065 = vrot.lane.b32.xlu0 %v1064_v18, %s1833_s25 }
 0x527   :  { %1145 = vrot.lane.b32.xlu1 %v1144_v20, %s1829_s20 }
 0x528   :  { %1078 = vrot.lane.b32.xlu0 %v1077_v22, %s1829_s20 }
 0x52b   :  { %1150 = vrot.lane.b32.xlu1 %v1149_v23, %s1834_s28 }
 0x52c   :  { %1084 = vrot.lane.b32.xlu0 %v1083_v24, %s1834_s28 }
 0x52f   :  { %1357 = vrot.lane.b32.xlu1 %v1797_v44, %s1836_s11 }
 0x530   :  { %1296 = vrot.lane.b32.xlu0 %v1933_v13, %s1835_s29 }
 0x585   :  { %v1100_v25 = vpop.permute.xlu1 %1099 }
 0x586   :  { %1102 = vst.msk [vmem:[#allocation4 + $0x2] sm:$0x3] %vm1030_vm4, %v1100_v25  ;;  %v1028_v26 = vpop.permute.xlu0 %1027 }
 0x587   :  { %1031 = vst.msk [vmem:[#allocation4] sm:$0x3] %vm1030_vm4, %v1028_v26 }
 0x589   :  { %v1112_v27 = vpop.permute.xlu1 %1111 }
 0x58a   :  { %1114 = vst.msk [vmem:[#allocation4 + $0x2] sm:$0x3] %vm1043_vm5, %v1112_v27  ;;  %v1041_v28 = vpop.permute.xlu0 %1040 }
 0x58b   :  { %1044 = vst.msk [vmem:[#allocation4] sm:$0x3] %vm1043_vm5, %v1041_v28 }
 0x58d   :  { %v1129_v29 = vpop.permute.xlu1 %1128 }
 0x58e   :  { %v1060_v30 = vpop.permute.xlu0 %1059 }
 0x591   :  { %v1117_v31 = vpop.permute.xlu1 %1116 }
 0x592   :  { %1119 = vst.msk [vmem:[#allocation4 + $0x2] sm:$0x3] %vm1049_vm6, %v1117_v31  ;;  %v1047_v32 = vpop.permute.xlu0 %1046 }
 0x593   :  { %1050 = vst.msk [vmem:[#allocation4] sm:$0x3] %vm1049_vm6, %v1047_v32 }
 0x594   :  { %1131 = vst.msk [vmem:[#allocation4 + $0x2] sm:$0x3] %vm1062_vm7, %v1129_v29  ;;  %1063 = vst.msk [vmem:[#allocation4] sm:$0x3] %vm1062_vm7, %v1060_v30 }
 0x595   :  { %v1134_v13 = vpop.permute.xlu1 %1133 }
 0x596   :  { %1136 = vst.msk [vmem:[#allocation4 + $0x2] sm:$0x3] %vm1068_vm8, %v1134_v13  ;;  %v1066_v33 = vpop.permute.xlu0 %1065 }
 0x597   :  { %1069 = vst.msk [vmem:[#allocation4] sm:$0x3] %vm1068_vm8, %v1066_v33 }
 0x599   :  { %v1146_v34 = vpop.permute.xlu1 %1145 }
 0x59a   :  { %1148 = vst.msk [vmem:[#allocation4 + $0x2] sm:$0x3] %vm1081_vm9, %v1146_v34  ;;  %v1079_v35 = vpop.permute.xlu0 %1078 }
 0x59b   :  { %1082 = vst.msk [vmem:[#allocation4] sm:$0x3] %vm1081_vm9, %v1079_v35 }
 0x59d   :  { %v1151_v36 = vpop.permute.xlu1 %1150 }
 0x59e   :  { %1153 = vst.msk [vmem:[#allocation4 + $0x2] sm:$0x3] %vm1087_vm10, %v1151_v36  ;;  %v1085_v37 = vpop.permute.xlu0 %1084 }
 0x59f   :  { %1088 = vst.msk [vmem:[#allocation4] sm:$0x3] %vm1087_vm10, %v1085_v37 }
 0x5a1   :  { %v1358_v53 = vpop.permute.xlu1 %1357 }
 0x5a2   :  { %v1297_v47 = vpop.permute.xlu0 %1296 }
 0x5a6   :  { %v1477_v38 = vld.sshfl [vmem:[#allocation4] sm:$0x33 pattern:$0x76325410] }
 0x5a7   :  { %v1163_v39 = vcombine.high %v1477_v38, %v1477_v38  ;;  %v1166_v41 = vpack.c.bf16 %v1477_v38, %v1477_v38 }
 0x5a9   :  { %v1167_v40 = vpack.c.bf16 %v1163_v39, %v1163_v39 }
 0x5ab   :  { %1331 = vmatprep.mubr.bf16.mxu0 %v1167_v40 }
 0x5ac   :  { %1332 = vmatmul.mubr.bf16.vlgmr.msra.gmra.mrb[36].mxu0 %v1166_v41 }
 0x5ad   :  { %1717 = vmatprep.mubr.msk.bf16.mxu0 %vm1823_vm1, %v1822_v12  ;;  %1714 = vmatpush3.bf16.msra.mxu0 %v1795_v42  ;;  %vm1403_vm1 = vcmask 74752  }
 0x5ae   :  { %1715 = vmatprep.subr.bf16.mxu0 %v1822_v12 }
 0x5b1   :  { %1716 = vmatpush3.bf16.msra.mxu0 %v1796_v43 }
 0x67f   :  { %v1568_v45 = vpop.f32.mrb[36].mxu0 }
 0x680   :  { %v1569_v46 = vpop.f32.mrb[37].mxu0 }
 0x681   :  { %v1570_v48 = vadd.f32 %v1569_v46, %v1568_v45  ;;  %v1571_v49 = vpop.f32.mrb[38].mxu0 }
 0x682   :  { %v1572_v50 = vpop.f32.mrb[39].mxu0 }
 0x683   :  { %v1334_v51 = vadd.f32 %v1570_v48, %v1297_v47 }
 0x685   :  { %v1339_v52 = vmax.f32 %v1334_v51, 0.0 }
 0x687   :  { %v1340_v12 = vpack.c.bf16 %v1339_v52, %v1339_v52 }
 0x689   :  { %1718 = vmatmul.mubr.msk.bf16.vlgmr.msra.gmra.mrb[40].mxu0 %vm822_vm14, %v1340_v12 }
 0x75c   :  { %v1397_v54 = vpop.f32.mrb[40].mxu0 }
 0x75d   :  { %v1398_v55 = vadd.f32 %v1397_v54, %v1358_v53  ;;  %v1719_v56 = vpop.f32.mrb[41].mxu0 }
 0x75e   :  { %v1400_v57 = vpop.f32.mrb[42].mxu0 }
 0x75f   :  { %v1720_v58 = vpop.f32.mrb[43].mxu0  ;;  %1404 = vst.msk [vmem:[#allocation5] sm:$0x3] %vm1403_vm1, %v1398_v55 }
 0x760   :  { %1809 = shalt.err (!%p1806_p4)
}
 0x761   :  { %s1810_s14 = scalar_lea.hbm %s2214_s8, 32 }
 0x762   :  { %p1811_p5 = scmp.ne.s32.totalorder %s2214_s8, %s1810_s14  ;;  %p1814_p6 = scmp.lt.u32.totalorder %s1810_s14, %s2214_s8 }
 0x764   :  { %p1816_p7 = pnand %p1814_p6, %p1811_p5 }
 0x766   :  { %1819 = shalt.err (!%p1816_p7)
}
 0x767   :  { %1414 = dma.vmem_to_hbm [thread:$0]  %s1412_s12, 32, %s2214_s8, [#allocation6]  }
 0x768   :  { %1820 = dma.done.wait [#allocation6], 32  }
 0x769   :  { %1821 = vsyncadd [#allocation6], 4294967264 }
 0x76a   :  { %1418 = vsyncpa [#allocation6], 1 }

</bundles_post_ra>
